<compile_context>
chip_gen: v7x
topology: tpu7x:2x2x1
jax: 0.10.0
libtpu: 0.0.40
codegen_flags: <defaults>
</compile_context>

<pallas_src>
import jax
import jax.numpy as jnp
from jax.experimental import pallas as pl
from jax.experimental.pallas import tpu as pltpu


def _round_up(n, m):
    return ((n + m - 1) // m) * m


def _make_mlp_kernel(num_linear):
    """Fused MLP kernel: `num_linear` Linear layers with ReLU between them."""

    def kernel(*refs):
        x_ref, o_ref = refs[0], refs[-1]
        wb_refs = refs[1:-1]

        h = x_ref[...]                                   # (tile, d_in)
        for l in range(num_linear):
            w = wb_refs[2 * l][...]                      # (d_in_l, d_out_l)
            b = wb_refs[2 * l + 1][...]                  # (1, d_out_l) f32
            # Cast the activation to the weight dtype only at the dot operand
            # (no-op in the f32 path); accumulate on the MXU in f32.
            acc = jnp.dot(h.astype(w.dtype), w,
                          preferred_element_type=jnp.float32)
            acc = acc + b.astype(jnp.float32)            # bias/ReLU stay f32
            if l < num_linear - 1:
                h = jnp.maximum(acc, 0.0)
            else:
                o_ref[...] = acc.astype(o_ref.dtype)

    return kernel


def _reference_forward(x, params, operand_dtype=None):
    """Plain-JAX reference mirroring nn.Sequential(Linear, ReLU, ..., Linear).

    If operand_dtype is set, dot operands are rounded to it (f32 accumulation),
    mirroring the kernel's bf16-streaming mode.
    """
    params = list(params)

    def _dot(a, b):
        if operand_dtype is not None:
            a = a.astype(operand_dtype)
            b = b.astype(operand_dtype)
        return jnp.dot(a.astype(jnp.float32), b.astype(jnp.float32))

    h = x
    for w, b in params[:-1]:
        h = jnp.maximum(_dot(h, w) + b.astype(jnp.float32), 0.0)
    w_last, b_last = params[-1]
    return _dot(h, w_last) + b_last.astype(jnp.float32)


def ibp_model_forward(x, params, *, block_m=2048, stream_dtype=None,
                      min_pallas_batch=64):
    """Fused Linear/ReLU/.../Linear forward pass in one batched Pallas kernel.

    params: sequence of (W, b) with W of shape (in_features, out_features) and
    b of shape (1, out_features)  (i.e. y = x @ W + b == PyTorch Linear).
    stream_dtype: optionally bf16 — stream activations/weights at half width
    (recommended on v6e/v7x), keeping f32 accumulation and element-wise math.
    """
    params = [(w, b) for (w, b) in params]
    num_linear = len(params)
    batch, d_in = x.shape
    d_out = params[-1][0].shape[1]
    out_dtype = x.dtype

    # Tiny batches: launch + weight DMA dominate — a fused XLA dot chain wins.
    if batch < min_pallas_batch:
        return _reference_forward(x, params,
                                  operand_dtype=stream_dtype).astype(out_dtype)

    # Optional half-width streaming of x / weights (biases stay f32).
    if stream_dtype is not None:
        x = x.astype(stream_dtype)
        params = [(w.astype(stream_dtype), b) for (w, b) in params]

    # ---- batch tiling ------------------------------------------------------
    # >= 2 tiles so v7x's two TensorCores both get work; tiles capped at
    # block_m and kept a multiple of 8 sublanes.  Ragged last block is fine:
    # rows are independent and Pallas only writes back in-bounds output rows.
    tm = int(min(block_m, _round_up(pl.cdiv(batch, 2), 8)))
    tm = max(tm, 8)
    grid = (pl.cdiv(batch, tm),)

    # ---- operands & specs --------------------------------------------------
    operands = [x]
    in_specs = [pl.BlockSpec((tm, d_in), lambda i: (i, 0))]
    for w, b in params:
        operands += [w, b]
        in_specs += [
            pl.BlockSpec(w.shape, lambda i: (0, 0)),   # resident in VMEM
            pl.BlockSpec(b.shape, lambda i: (0, 0)),
        ]

    out_specs = pl.BlockSpec((tm, d_out), lambda i: (i, 0))
    out_shape = jax.ShapeDtypeStruct((batch, d_out), out_dtype)

    # ---- advisory cost estimate -------------------------------------------
    flops = 2 * batch * sum(int(w.shape[0]) * int(w.shape[1]) for w, _ in params)
    param_bytes = sum(int(w.size) * w.dtype.itemsize + int(b.size) * b.dtype.itemsize
                      for w, b in params)
    bytes_accessed = (batch * d_in * x.dtype.itemsize
                      + batch * d_out * jnp.dtype(out_dtype).itemsize
                      + param_bytes)
    cost = pl.CostEstimate(flops=flops, transcendentals=0,
                           bytes_accessed=bytes_accessed)

    return pl.pallas_call(
        _make_mlp_kernel(num_linear),
        out_shape=out_shape,
        grid=grid,
        in_specs=in_specs,
        out_specs=out_specs,
        compiler_params=pltpu.CompilerParams(
            dimension_semantics=("parallel",)),
        cost_estimate=cost,
    )(*operands)


def _init_linear(key, in_features, out_features):
    # Deterministic synthetic init (PyTorch-style uniform bound), stored as
    # (in, out) weights / (1, out) biases so the forward is x @ W + b.
    kw, kb = jax.random.split(key)
    bound = 1.0 / jnp.sqrt(in_features)
    w = jax.random.uniform(kw, (in_features, out_features), jnp.float32,
                           minval=-bound, maxval=bound)
    b = jax.random.uniform(kb, (1, out_features), jnp.float32,
                           minval=-bound, maxval=bound)
    return w, b


if __name__ == "__main__":
    key = jax.random.PRNGKey(0)
    k_x, k_xl, k1, k2, k3 = jax.random.split(key, 5)

    batch, d_in, d_hidden, d_out = 2, 32, 64, 16
    params = (
        _init_linear(k1, d_in, d_hidden),
        _init_linear(k2, d_hidden, d_hidden),
        _init_linear(k3, d_hidden, d_out),
    )

    # Module-spec tiny batch: default dispatch takes the cheap XLA fallback.
    x_small = jax.random.normal(k_x, (batch, d_in), jnp.float32)
    y_small = jax.block_until_ready(ibp_model_forward(x_small, params))
    assert y_small.shape == (batch, d_out)
    assert jnp.allclose(y_small, _reference_forward(x_small, params),
                        atol=1e-5, rtol=1e-5), "small-batch (fallback) mismatch"

    # Same tiny batch forced through the Pallas path: exercises a single
    # ragged 8-row tile (only 2 valid rows).
    y_small_k = jax.block_until_ready(
        ibp_model_forward(x_small, params, min_pallas_batch=0))
    assert y_small_k.shape == (batch, d_out)
    assert jnp.allclose(y_small_k, _reference_forward(x_small, params),
                        atol=1e-5, rtol=1e-5), "small-batch (pallas) mismatch"

    # Larger batch exercises the real perf path: 2 parallel tiles, resident
    # weights, ragged last block, direct (tm, d_out) stores (no pad/transpose).
    big_batch = 600
    x_big = jax.random.normal(k_xl, (big_batch, d_in), jnp.float32)
    y_big = jax.block_until_ready(ibp_model_forward(x_big, params))
    assert y_big.shape == (big_batch, d_out)
    assert jnp.allclose(y_big, _reference_forward(x_big, params),
                        atol=1e-4, rtol=1e-4), "big-batch mismatch vs reference"

    # bf16 streaming path (v6e/v7x HBM-traffic win; f32 accumulation kept).
    y_big_bf16 = jax.block_until_ready(
        ibp_model_forward(x_big, params, stream_dtype=jnp.bfloat16))
    assert y_big_bf16.shape == (big_batch, d_out)
    assert jnp.allclose(
        y_big_bf16,
        _reference_forward(x_big, params, operand_dtype=jnp.bfloat16),
        atol=2e-3, rtol=2e-3), "bf16-stream mismatch vs bf16 reference"

    # TODO(synk): compute_bounds / interval_bound_propagation /
    # relu_relaxaion_approximation are not part of forward(); only the
    # Sequential forward pass is implemented here.
    print("KERNEL_OK")
</pallas_src>

<mosaic_0001>
module attributes {stable_mosaic.version = 11 : i64} {
  func.func @kernel(%arg0: i32, %arg1: memref<8x32xf32, #tpu.memory_space<vmem>>, %arg2: memref<32x64xf32, #tpu.memory_space<vmem>>, %arg3: memref<1x64xf32, #tpu.memory_space<vmem>>, %arg4: memref<64x64xf32, #tpu.memory_space<vmem>>, %arg5: memref<1x64xf32, #tpu.memory_space<vmem>>, %arg6: memref<64x16xf32, #tpu.memory_space<vmem>>, %arg7: memref<1x16xf32, #tpu.memory_space<vmem>>, %arg8: memref<8x16xf32, #tpu.memory_space<vmem>>) attributes {dimension_semantics = [#tpu.dimension_semantics<parallel>], iteration_bounds = array<i64: 1>, scalar_prefetch = 0 : i64, scratch_operands = 0 : i64, tpu.core_type = #tpu.core_type<tc>, window_params = [{transform_indices = @transform_0, window_bounds = array<i64: 8, 32>}, {pipeline_mode = #tpu.pipeline_mode<synchronous>, transform_indices = @transform_1, window_bounds = array<i64: 32, 64>}, {pipeline_mode = #tpu.pipeline_mode<synchronous>, transform_indices = @transform_2, window_bounds = array<i64: 1, 64>}, {pipeline_mode = #tpu.pipeline_mode<synchronous>, transform_indices = @transform_3, window_bounds = array<i64: 64, 64>}, {pipeline_mode = #tpu.pipeline_mode<synchronous>, transform_indices = @transform_4, window_bounds = array<i64: 1, 64>}, {pipeline_mode = #tpu.pipeline_mode<synchronous>, transform_indices = @transform_5, window_bounds = array<i64: 64, 16>}, {pipeline_mode = #tpu.pipeline_mode<synchronous>, transform_indices = @transform_6, window_bounds = array<i64: 1, 16>}, {transform_indices = @transform_7, window_bounds = array<i64: 8, 16>}]} {
    %c0 = arith.constant 0 : index
    %c0_0 = arith.constant 0 : index
    %0 = vector.load %arg1[%c0, %c0_0] : memref<8x32xf32, #tpu.memory_space<vmem>>, vector<8x32xf32>
    %c0_1 = arith.constant 0 : index
    %c0_2 = arith.constant 0 : index
    %1 = vector.load %arg2[%c0_1, %c0_2] : memref<32x64xf32, #tpu.memory_space<vmem>>, vector<32x64xf32>
    %c0_3 = arith.constant 0 : index
    %c0_4 = arith.constant 0 : index
    %2 = vector.load %arg3[%c0_3, %c0_4] : memref<1x64xf32, #tpu.memory_space<vmem>>, vector<1x64xf32>
    %cst = arith.constant dense<0.000000e+00> : vector<8x64xf32>
    %3 = tpu.matmul %0, %1, %cst {dimension_numbers = #tpu.dot_dimension_numbers<[1], [0], [0], [1], [0, 0, 1, 1], [], []>} : vector<8x32xf32>, vector<32x64xf32>, vector<8x64xf32> -> vector<8x64xf32>
    %4 = vector.broadcast %2 : vector<1x64xf32> to vector<8x64xf32>
    %5 = arith.addf %3, %4 : vector<8x64xf32>
    %cst_5 = arith.constant 0.000000e+00 : f32
    %6 = vector.broadcast %cst_5 : f32 to vector<8x64xf32>
    %7 = arith.maximumf %5, %6 : vector<8x64xf32>
    %c0_6 = arith.constant 0 : index
    %c0_7 = arith.constant 0 : index
    %8 = vector.load %arg4[%c0_6, %c0_7] : memref<64x64xf32, #tpu.memory_space<vmem>>, vector<64x64xf32>
    %c0_8 = arith.constant 0 : index
    %c0_9 = arith.constant 0 : index
    %9 = vector.load %arg5[%c0_8, %c0_9] : memref<1x64xf32, #tpu.memory_space<vmem>>, vector<1x64xf32>
    %cst_10 = arith.constant dense<0.000000e+00> : vector<8x64xf32>
    %10 = tpu.matmul %7, %8, %cst_10 {dimension_numbers = #tpu.dot_dimension_numbers<[1], [0], [0], [1], [0, 0, 1, 1], [], []>} : vector<8x64xf32>, vector<64x64xf32>, vector<8x64xf32> -> vector<8x64xf32>
    %11 = vector.broadcast %9 : vector<1x64xf32> to vector<8x64xf32>
    %12 = arith.addf %10, %11 : vector<8x64xf32>
    %cst_11 = arith.constant 0.000000e+00 : f32
    %13 = vector.broadcast %cst_11 : f32 to vector<8x64xf32>
    %14 = arith.maximumf %12, %13 : vector<8x64xf32>
    %c0_12 = arith.constant 0 : index
    %c0_13 = arith.constant 0 : index
    %15 = vector.load %arg6[%c0_12, %c0_13] : memref<64x16xf32, #tpu.memory_space<vmem>>, vector<64x16xf32>
    %c0_14 = arith.constant 0 : index
    %c0_15 = arith.constant 0 : index
    %16 = vector.load %arg7[%c0_14, %c0_15] : memref<1x16xf32, #tpu.memory_space<vmem>>, vector<1x16xf32>
    %cst_16 = arith.constant dense<0.000000e+00> : vector<8x16xf32>
    %17 = tpu.matmul %14, %15, %cst_16 {dimension_numbers = #tpu.dot_dimension_numbers<[1], [0], [0], [1], [0, 0, 1, 1], [], []>} : vector<8x64xf32>, vector<64x16xf32>, vector<8x16xf32> -> vector<8x16xf32>
    %18 = vector.broadcast %16 : vector<1x16xf32> to vector<8x16xf32>
    %19 = arith.addf %17, %18 : vector<8x16xf32>
    %c0_17 = arith.constant 0 : index
    %c0_18 = arith.constant 0 : index
    %20 = vector.load %arg8[%c0_17, %c0_18] : memref<8x16xf32, #tpu.memory_space<vmem>>, vector<8x16xf32>
    tpu.vector_store %arg8[%c0_17, %c0_18], %19 {strides = array<i32>} : memref<8x16xf32, #tpu.memory_space<vmem>>, vector<8x16xf32>,
    return
  }
  func.func @transform_0(%arg0: i32) -> (i32, i32) {
    %c0_i32 = arith.constant 0 : i32
    %c0_i32_0 = arith.constant 0 : i32
    return %arg0, %c0_i32 : i32, i32
  }
  func.func @transform_1(%arg0: i32) -> (i32, i32) {
    %c0_i32 = arith.constant 0 : i32
    %c0_i32_0 = arith.constant 0 : i32
    %c0_i32_1 = arith.constant 0 : i32
    return %c0_i32, %c0_i32_0 : i32, i32
  }
  func.func @transform_2(%arg0: i32) -> (i32, i32) {
    %c0_i32 = arith.constant 0 : i32
    %c0_i32_0 = arith.constant 0 : i32
    %c0_i32_1 = arith.constant 0 : i32
    return %c0_i32, %c0_i32_0 : i32, i32
  }
  func.func @transform_3(%arg0: i32) -> (i32, i32) {
    %c0_i32 = arith.constant 0 : i32
    %c0_i32_0 = arith.constant 0 : i32
    %c0_i32_1 = arith.constant 0 : i32
    return %c0_i32, %c0_i32_0 : i32, i32
  }
  func.func @transform_4(%arg0: i32) -> (i32, i32) {
    %c0_i32 = arith.constant 0 : i32
    %c0_i32_0 = arith.constant 0 : i32
    %c0_i32_1 = arith.constant 0 : i32
    return %c0_i32, %c0_i32_0 : i32, i32
  }
  func.func @transform_5(%arg0: i32) -> (i32, i32) {
    %c0_i32 = arith.constant 0 : i32
    %c0_i32_0 = arith.constant 0 : i32
    %c0_i32_1 = arith.constant 0 : i32
    return %c0_i32, %c0_i32_0 : i32, i32
  }
  func.func @transform_6(%arg0: i32) -> (i32, i32) {
    %c0_i32 = arith.constant 0 : i32
    %c0_i32_0 = arith.constant 0 : i32
    %c0_i32_1 = arith.constant 0 : i32
    return %c0_i32, %c0_i32_0 : i32, i32
  }
  func.func @transform_7(%arg0: i32) -> (i32, i32) {
    %c0_i32 = arith.constant 0 : i32
    %c0_i32_0 = arith.constant 0 : i32
    return %arg0, %c0_i32 : i32, i32
  }
}

</mosaic_0001>

<bundles_post_ra>
// kernel: tpu_custom_call.1
= control target key start
LH: loop header
LB: loop body
LE: loop exit
PB: predicated region body
PF: predicated region fallthrough
CT: control target
= control target key end

     0   :  { %12 = vsyncpa [#allocation3], 0  ;;  %s626_s0 = inlined_call_operand.vmem [shape: f32[2,32], index: 0, kind: input, shape index: {}]   ;;  %s627_s1 = inlined_call_operand.hbm [shape: f32[32,64], index: 1, kind: input, shape index: {}]   ;;  %s628_s2 = inlined_call_operand.vmem [shape: f32[1,64], index: 2, kind: input, shape index: {}]   ;;  %s629_s3 = inlined_call_operand.vmem [shape: f32[64,64], index: 3, kind: input, shape index: {}]   ;;  %s630_s4 = inlined_call_operand.vmem [shape: f32[1,64], index: 4, kind: input, shape index: {}]   ;;  %s631_s5 = inlined_call_operand.vmem [shape: f32[64,16], index: 5, kind: input, shape index: {}]   ;;  %s632_s6 = inlined_call_operand.vmem [shape: f32[1,16], index: 6, kind: input, shape index: {}]   ;;  %s633_s7 = inlined_call_operand.hbm [shape: f32[2,16], index: 7, kind: output, shape index: {}]  }
   0x1   :  { %13 = vsyncpa [#allocation4], 0  ;;  %s490_s24 = smov [#allocation2]   ;;  %s442_s28 = scalar_lea.hbm %s627_s1, 512 }
   0x2   :  { %s21_s25 = sshll.u32 %s490_s24, 4  ;;  %p443_p0 = scmp.ne.s32.totalorder %s627_s1, %s442_s28  ;;  %s22_s25 = int_to_ptr.vmem [resolvable:$true] %s21_s25 }
   0x3   :  { %p446_p1 = scmp.lt.u32.totalorder %s442_s28, %s627_s1 }
   0x5   :  { %p448_p2 = pnand %p446_p1, %p443_p0 }
   0x7   :  { %451 = shalt.err (!%p448_p2)
}
   0x8   :  { %s452_s10 = scalar_lea.vmem %s22_s25, 512  ;;  %p457_p4 = scmp.lt.s32.totalorder %s22_s25, %s22_s25 }
   0x9   :  { %p453_p3 = scmp.ne.s32.totalorder %s22_s25, %s452_s10  ;;  %p458_p5 = scmp.lt.s32.totalorder %s452_s10, %s452_s10 }
   0xb   :  { %p459_p6 = por %p458_p5, %p457_p4 }
   0xd   :  { %p460_p7 = pnand %p459_p6, %p453_p3 }
   0xf   :  { %463 = shalt.err (!%p460_p7)
}
  0x10   :  { %s491_s11 = smov 128   ;;  %s492_s12 = smov 8  }
  0x11   :  { %27 = dma.hbm_to_vmem [thread:$0]  %s627_s1, 512, %s22_s25, [#allocation3], %s491_s11, %s491_s11, %s492_s12  }
  0x12   :  { %486 = dma.done.wait [#allocation3], 512  }
  0x13   :  { %487 = vsyncadd [#allocation3], 4294966784  ;;  %v493_v0 = vmov 0.0|0.0   ;;  %vm494_vm0 = vmmov 0   ;;  %v495_v1 = vmov 0.0   ;;  %v42_v2 = vld [vmem:[#allocation2] sm:$0xff] }
  0x14   :  { %403 = vmatprep.subr.bf16.mxu0 %v493_v0  ;;  %362 = vmatprep.mubr.msk.f32.mxu0 %vm494_vm0, %v495_v1  ;;  %v43_v3 = vld [vmem:[#allocation2 + $0x8] sm:$0xff]  ;;  %v44_v4 = vld [vmem:[#allocation2 + $0x10] sm:$0xff]  ;;  %v45_v6 = vld [vmem:[#allocation2 + $0x18] sm:$0xff]  ;;  %vm53_vm1 = vcmask 261120   ;;  %vm143_vm2 = vcmask 523264   ;;  %vm306_vm3 = vcmask 130048  }
  0x15   :  { %409 = vmatprep.subr.bf16.mxu1 %v493_v0  ;;  %381 = vmatprep.mubr.msk.f32.mxu1 %vm494_vm0, %v495_v1  ;;  %v404_v5 = vpack.c.bf16 %v43_v3, %v42_v2  ;;  %v128_v7 = vld [vmem:[%s629_s3] sm:$0xff]  ;;  %v129_v8 = vld [vmem:[%s629_s3 + $0x8] sm:$0xff]  ;;  %v130_v9 = vld [vmem:[%s629_s3 + $0x10] sm:$0xff]  ;;  %v407_v11 = vpack.c.bf16 %v45_v6, %v44_v4 }
  0x16   :  { %v131_v10 = vld [vmem:[%s629_s3 + $0x18] sm:$0xff]  ;;  %v410_v12 = vpack.c.bf16 %v129_v8, %v128_v7  ;;  %v132_v14 = vld [vmem:[%s629_s3 + $0x20] sm:$0xff]  ;;  %v133_v15 = vld [vmem:[%s629_s3 + $0x28] sm:$0xff] }
  0x17   :  { %405 = vmatpush3.bf16.msra.mxu0 %v404_v5  ;;  %v413_v13 = vpack.c.bf16 %v131_v10, %v130_v9  ;;  %v41_v16 = vld [vmem:[%s626_s0] sm:$0xff]  ;;  %v416_v17 = vpack.c.bf16 %v133_v15, %v132_v14  ;;  %v134_v18 = vld [vmem:[%s629_s3 + $0x30] sm:$0xff]  ;;  %v135_v19 = vld [vmem:[%s629_s3 + $0x38] sm:$0xff] }
  0x18   :  { %406 = vmatprep.subr.bf16.mxu0 %v493_v0  ;;  %411 = vmatpush3.bf16.msra.mxu1 %v410_v12  ;;  %v419_v20 = vpack.c.bf16 %v135_v19, %v134_v18  ;;  %v218_v21 = vld [vmem:[%s631_s5] sm:$0xff]  ;;  %v219_v22 = vld [vmem:[%s631_s5 + $0x8] sm:$0xff]  ;;  %v220_v23 = vld [vmem:[%s631_s5 + $0x10] sm:$0xff] }
  0x19   :  { %412 = vmatprep.subr.bf16.mxu1 %v493_v0  ;;  %v422_v24 = vpack.c.bf16 %v219_v22, %v218_v21  ;;  %v221_v25 = vld [vmem:[%s631_s5 + $0x18] sm:$0xff]  ;;  %v222_v27 = vld [vmem:[%s631_s5 + $0x20] sm:$0xff]  ;;  %v223_v28 = vld [vmem:[%s631_s5 + $0x28] sm:$0xff] }
  0x1a   :  { %v425_v26 = vpack.c.bf16 %v221_v25, %v220_v23  ;;  %v428_v29 = vpack.c.bf16 %v223_v28, %v222_v27  ;;  %v325_v30 = vld [vmem:[%s628_s2] ss:$0 sm:$0xff]  ;;  %v224_v35 = vld [vmem:[%s631_s5 + $0x30] sm:$0xff]  ;;  %v225_v36 = vld [vmem:[%s631_s5 + $0x38] sm:$0xff] }
  0x1b   :  { %408 = vmatpush3.bf16.msra.mxu0 %v407_v11  ;;  %v431_v37 = vpack.c.bf16 %v225_v36, %v224_v35  ;;  %v327_v38 = vld [vmem:[%s630_s4] ss:$0 sm:$0xff] }
  0x1c   :  { %421 = vmatprep.subr.bf16.mxu0 %v493_v0  ;;  %414 = vmatpush3.bf16.msra.mxu1 %v413_v13  ;;  %v329_v43 = vld [vmem:[%s632_s6] ss:$0 sm:$0xff] }
  0x1d   :  { %415 = vmatprep.subr.bf16.mxu1 %v493_v0 }
  0x1e   :  { %363 = vmatmul.mubr.msk.f32.vlgmr.msra.gmra.mrb[0].mxu0 %vm53_vm1, %v41_v16 }
  0x1f   :  { %400 = vmatprep.mubr.msk.f32.mxu0 %vm494_vm0, %v495_v1  ;;  %423 = vmatpush3.bf16.msra.mxu0 %v422_v24 }
  0x20   :  { %417 = vmatpush3.bf16.msra.mxu1 %v416_v17  ;;  %424 = vmatprep.subr.bf16.mxu0 %v493_v0 }
  0x21   :  { %418 = vmatprep.subr.bf16.mxu1 %v493_v0 }
  0x23   :  { %426 = vmatpush3.bf16.msra.mxu0 %v425_v26 }
  0x24   :  { %420 = vmatpush3.bf16.msra.mxu1 %v419_v20  ;;  %427 = vmatprep.subr.bf16.mxu0 %v493_v0 }
  0x27   :  { %429 = vmatpush3.bf16.msra.mxu0 %v428_v29 }
  0x28   :  { %430 = vmatprep.subr.bf16.mxu0 %v493_v0 }
  0x2b   :  { %432 = vmatpush3.bf16.msra.mxu0 %v431_v37 }
  0xf1   :  { %v123_v31 = vpop.f32.mrb[0].mxu0 }
  0xf2   :  { %v124_v32 = vadd.f32 %v325_v30, %v123_v31  ;;  %v364_v33 = vpop.f32.mrb[1].mxu0 }
  0xf4   :  { %v127_v34 = vmax.f32 %v124_v32, 0.0 }
  0xf6   :  { %382 = vmatmul.mubr.msk.f32.vlgmr.msra.gmra.mrb[0].mxu1 %vm143_vm2, %v127_v34 }
 0x1c9   :  { %v213_v39 = vpop.f32.mrb[0].mxu1 }
 0x1ca   :  { %v214_v40 = vadd.f32 %v327_v38, %v213_v39  ;;  %v383_v41 = vpop.f32.mrb[1].mxu1 }
 0x1cc   :  { %v217_v42 = vmax.f32 %v214_v40, 0.0 }
 0x1ce   :  { %401 = vmatmul.mubr.msk.f32.vlgmr.msra.gmra.mrb[2].mxu0 %vm143_vm2, %v217_v42 }
 0x2a1   :  { %v302_v44 = vpop.f32.mrb[2].mxu0 }
 0x2a2   :  { %v303_v45 = vadd.f32 %v329_v43, %v302_v44  ;;  %v402_v46 = vpop.f32.mrb[3].mxu0 }
 0x2a4   :  { %307 = vst.msk [vmem:[#allocation5] sm:$0xff] %vm306_vm3, %v303_v45 }
 0x2a5   :  { %312 = vsyncadd [#allocation4], 96  ;;  %s496_s5 = smov [#allocation5]  }
 0x2a6   :  { %s313_s27 = sshll.u32 %s496_s5, 4  ;;  %s314_s27 = int_to_ptr.vmem [resolvable:$true] %s313_s27 }
 0x2a7   :  { %s464_s28 = scalar_lea.vmem %s314_s27, 32  ;;  %s468_s4 = scalar_lea.vmem %s314_s27, 128 }
 0x2a8   :  { %p465_p8 = scmp.ne.s32.totalorder %s314_s27, %s464_s28  ;;  %p469_p9 = scmp.lt.s32.totalorder %s314_s27, %s314_s27 }
 0x2a9   :  { %p470_p10 = scmp.lt.s32.totalorder %s468_s4, %s464_s28 }
 0x2ab   :  { %p471_p11 = por %p470_p10, %p469_p9 }
 0x2ad   :  { %p472_p12 = pnand %p471_p11, %p465_p8 }
 0x2af   :  { %475 = shalt.err (!%p472_p12)
}
 0x2b0   :  { %s476_s6 = scalar_lea.hbm %s633_s7, 32 }
 0x2b1   :  { %p477_p13 = scmp.ne.s32.totalorder %s633_s7, %s476_s6  ;;  %p480_p0 = scmp.lt.u32.totalorder %s476_s6, %s633_s7 }
 0x2b3   :  { %p482_p1 = pnand %p480_p0, %p477_p13 }
 0x2b5   :  { %485 = shalt.err (!%p482_p1)
}
 0x2b6   :  { %s497_s11 = smov 32   ;;  %s498_s12 = smov 2  }
 0x2b7   :  { %319 = dma.vmem_to_hbm [thread:$0]  %s314_s27, 32, %s633_s7, [#allocation4], %s497_s11, %s497_s11, %s498_s12  }
 0x2b8   :  { %488 = dma.done.wait [#allocation4], 128  }
 0x2b9   :  { %489 = vsyncadd [#allocation4], 4294967168 }
 0x2ba   :  { %323 = vsyncpa [#allocation3], 1 }
 0x2bb   :  { %324 = vsyncpa [#allocation4], 1 }

</bundles_post_ra>
